<compile_context>
chip_gen: v5e
topology: v5e:2x2
jax: 0.10.0
libtpu: 0.0.40
codegen_flags: <defaults>
</compile_context>

<pallas_src>
import jax
import jax.numpy as jnp
from jax.experimental import pallas as pl
from jax.experimental.pallas import tpu as pltpu

OUT_PAD = 128  # lane-dense padded width for the final (B, 1) output


# ----------------------------------------------------------------------------
# Fused kernel: all highway layers + discriminator + sigmoid in one body.
# ----------------------------------------------------------------------------
def _make_fused_kernel(num_layers, hidden):
    def kernel(*refs):
        # refs = (x, W0, b0, ..., W_{L-1}, b_{L-1}, Wd, bd, out)
        x_ref = refs[0]
        o_ref = refs[-1]

        x = x_ref[...]
        for i in range(num_layers):            # unrolled: num_layers is static
            w = refs[1 + 2 * i][...]           # (fan_in, 3*hidden) = [gate|nonlin|lin]
            b = refs[2 + 2 * i][...]           # (1, 3*hidden)
            z = jnp.dot(x, w, preferred_element_type=jnp.float32) + b
            gate = jax.nn.sigmoid(z[:, 0 * hidden:1 * hidden])
            nonlin = jnp.maximum(z[:, 1 * hidden:2 * hidden], 0.0)
            lin = z[:, 2 * hidden:3 * hidden]
            x = lin + gate * (nonlin - lin)    # == gate*nonlin + (1-gate)*lin

        wd = refs[1 + 2 * num_layers][...]     # (hidden, 1)
        bd = refs[2 + 2 * num_layers][...]     # (1, 1)
        logit = jnp.dot(x, wd, preferred_element_type=jnp.float32) + bd
        prob = jax.nn.sigmoid(logit)           # (tile_b, 1)
        # Lane-dense store: broadcast to the padded slab (unmasked vst).
        o_ref[...] = jnp.broadcast_to(prob, o_ref.shape)

    return kernel


# ----------------------------------------------------------------------------
# Wrapper
# ----------------------------------------------------------------------------
def highway_forward(x, params):
    layers = params["layers"]                  # list of (W_cat, b_cat)
    wd, bd = params["discriminator"]
    num_layers = len(layers)
    hidden = wd.shape[0]
    B, in_size = x.shape

    # Batch grid (trivial grid=(1,) at small B; scales to large batch).
    tile_b = B if B <= 512 else 512
    grid = (pl.cdiv(B, tile_b),)

    flat_args = []
    in_specs = [pl.BlockSpec((tile_b, in_size), lambda i: (i, 0))]
    for (w, b) in layers:
        flat_args += [w, b]
        in_specs += [pl.BlockSpec(w.shape, lambda i: (0, 0)),
                     pl.BlockSpec(b.shape, lambda i: (0, 0))]
    flat_args += [wd, bd]
    in_specs += [pl.BlockSpec(wd.shape, lambda i: (0, 0)),
                 pl.BlockSpec(bd.shape, lambda i: (0, 0))]

    out_padded = pl.pallas_call(
        _make_fused_kernel(num_layers, hidden),
        out_shape=jax.ShapeDtypeStruct((B, OUT_PAD), jnp.float32),
        grid=grid,
        in_specs=in_specs,
        out_specs=pl.BlockSpec((tile_b, OUT_PAD), lambda i: (i, 0)),
        compiler_params=pltpu.CompilerParams(
            dimension_semantics=("parallel",)),
    )(x, *flat_args)
    return out_padded[:, :1]                   # (B, 1)


# ----------------------------------------------------------------------------
# Parameter setup (mimics nn.Linear init; weights stored transposed and the
# gate/nonlinear/linear branches concatenated along the output dim).
# ----------------------------------------------------------------------------
def init_highway_params(key, in_size, num_layers, reduction=4):
    hidden = in_size // reduction
    dims = [(in_size, hidden)] + [(hidden, hidden)] * (num_layers - 1)

    layers = []
    for (fan_in, fan_out) in dims:
        bound = 1.0 / float(fan_in) ** 0.5
        ws, bs = [], []
        for _branch in range(3):               # order: gate, nonlinear, linear
            key, kw, kb = jax.random.split(key, 3)
            ws.append(jax.random.uniform(kw, (fan_in, fan_out), jnp.float32,
                                         -bound, bound))
            bs.append(jax.random.uniform(kb, (1, fan_out), jnp.float32,
                                         -bound, bound))
        layers.append((jnp.concatenate(ws, axis=1),
                       jnp.concatenate(bs, axis=1)))

    key, kw, kb = jax.random.split(key, 3)
    bound = 1.0 / float(hidden) ** 0.5
    wd = jax.random.uniform(kw, (hidden, 1), jnp.float32, -bound, bound)
    bd = jax.random.uniform(kb, (1, 1), jnp.float32, -bound, bound)
    return {"layers": layers, "discriminator": (wd, bd)}


# Pure-JAX reference (same math as the PyTorch module).
def highway_forward_ref(x, params):
    for (w, b) in params["layers"]:
        hidden = w.shape[1] // 3
        z = x @ w + b
        gate = jax.nn.sigmoid(z[:, :hidden])
        nonlin = jax.nn.relu(z[:, hidden:2 * hidden])
        lin = z[:, 2 * hidden:]
        x = gate * nonlin + (1.0 - gate) * lin
    wd, bd = params["discriminator"]
    return jax.nn.sigmoid(x @ wd + bd)


# ----------------------------------------------------------------------------
if __name__ == "__main__":
    in_size = 32
    num_layers = 3
    reduction = 4
    batch = 8

    key = jax.random.PRNGKey(0)
    key, kx = jax.random.split(key)
    x = jax.random.normal(kx, (batch, in_size), jnp.float32)

    params = init_highway_params(key, in_size, num_layers, reduction)

    out = highway_forward(x, params)
    out = jax.block_until_ready(out)

    ref = highway_forward_ref(x, params)
    assert out.shape == (batch, 1), out.shape
    assert jnp.allclose(out, ref, atol=2e-5, rtol=2e-5), (out, ref)

    print("KERNEL_OK")
</pallas_src>

<mosaic_0001>
module attributes {stable_mosaic.version = 11 : i64} {
  func.func @kernel(%arg0: i32, %arg1: memref<8x32xf32, #tpu.memory_space<vmem>>, %arg2: memref<32x24xf32, #tpu.memory_space<vmem>>, %arg3: memref<1x24xf32, #tpu.memory_space<vmem>>, %arg4: memref<8x24xf32, #tpu.memory_space<vmem>>, %arg5: memref<1x24xf32, #tpu.memory_space<vmem>>, %arg6: memref<8x24xf32, #tpu.memory_space<vmem>>, %arg7: memref<1x24xf32, #tpu.memory_space<vmem>>, %arg8: memref<8x1xf32, #tpu.memory_space<vmem>>, %arg9: memref<1x1xf32, #tpu.memory_space<vmem>>, %arg10: memref<8x128xf32, #tpu.memory_space<vmem>>) attributes {dimension_semantics = [#tpu.dimension_semantics<parallel>], iteration_bounds = array<i64: 1>, scalar_prefetch = 0 : i64, scratch_operands = 0 : i64, tpu.core_type = #tpu.core_type<tc>, window_params = [{transform_indices = @transform_0, window_bounds = array<i64: 8, 32>}, {pipeline_mode = #tpu.pipeline_mode<synchronous>, transform_indices = @transform_1, window_bounds = array<i64: 32, 24>}, {pipeline_mode = #tpu.pipeline_mode<synchronous>, transform_indices = @transform_2, window_bounds = array<i64: 1, 24>}, {pipeline_mode = #tpu.pipeline_mode<synchronous>, transform_indices = @transform_3, window_bounds = array<i64: 8, 24>}, {pipeline_mode = #tpu.pipeline_mode<synchronous>, transform_indices = @transform_4, window_bounds = array<i64: 1, 24>}, {pipeline_mode = #tpu.pipeline_mode<synchronous>, transform_indices = @transform_5, window_bounds = array<i64: 8, 24>}, {pipeline_mode = #tpu.pipeline_mode<synchronous>, transform_indices = @transform_6, window_bounds = array<i64: 1, 24>}, {pipeline_mode = #tpu.pipeline_mode<synchronous>, transform_indices = @transform_7, window_bounds = array<i64: 8, 1>}, {pipeline_mode = #tpu.pipeline_mode<synchronous>, transform_indices = @transform_8, window_bounds = array<i64: 1, 1>}, {transform_indices = @transform_9, window_bounds = array<i64: 8, 128>}]} {
    %c0 = arith.constant 0 : index
    %c0_0 = arith.constant 0 : index
    %0 = vector.load %arg1[%c0, %c0_0] : memref<8x32xf32, #tpu.memory_space<vmem>>, vector<8x32xf32>
    %c0_1 = arith.constant 0 : index
    %c0_2 = arith.constant 0 : index
    %1 = vector.load %arg2[%c0_1, %c0_2] : memref<32x24xf32, #tpu.memory_space<vmem>>, vector<32x24xf32>
    %c0_3 = arith.constant 0 : index
    %c0_4 = arith.constant 0 : index
    %2 = vector.load %arg3[%c0_3, %c0_4] : memref<1x24xf32, #tpu.memory_space<vmem>>, vector<1x24xf32>
    %cst = arith.constant dense<0.000000e+00> : vector<8x24xf32>
    %3 = tpu.matmul %0, %1, %cst {dimension_numbers = #tpu.dot_dimension_numbers<[1], [0], [0], [1], [0, 0, 1, 1], [], []>} : vector<8x32xf32>, vector<32x24xf32>, vector<8x24xf32> -> vector<8x24xf32>
    %4 = vector.broadcast %2 : vector<1x24xf32> to vector<8x24xf32>
    %5 = arith.addf %3, %4 : vector<8x24xf32>
    %6 = vector.extract_strided_slice %5 {offsets = [0, 0], sizes = [8, 8], strides = [1, 1]} : vector<8x24xf32> to vector<8x8xf32>
    %7 = arith.negf %6 : vector<8x8xf32>
    %8 = math.exp %7 : vector<8x8xf32>
    %cst_5 = arith.constant 1.000000e+00 : f32
    %9 = vector.broadcast %cst_5 : f32 to vector<8x8xf32>
    %10 = arith.addf %9, %8 : vector<8x8xf32>
    %11 = arith.divf %9, %10 : vector<8x8xf32>
    %12 = vector.extract_strided_slice %5 {offsets = [0, 8], sizes = [8, 8], strides = [1, 1]} : vector<8x24xf32> to vector<8x8xf32>
    %cst_6 = arith.constant 0.000000e+00 : f32
    %13 = vector.broadcast %cst_6 : f32 to vector<8x8xf32>
    %14 = arith.maximumf %12, %13 : vector<8x8xf32>
    %15 = vector.extract_strided_slice %5 {offsets = [0, 16], sizes = [8, 8], strides = [1, 1]} : vector<8x24xf32> to vector<8x8xf32>
    %16 = arith.subf %14, %15 : vector<8x8xf32>
    %17 = arith.mulf %11, %16 : vector<8x8xf32>
    %18 = arith.addf %15, %17 : vector<8x8xf32>
    %c0_7 = arith.constant 0 : index
    %c0_8 = arith.constant 0 : index
    %19 = vector.load %arg4[%c0_7, %c0_8] : memref<8x24xf32, #tpu.memory_space<vmem>>, vector<8x24xf32>
    %c0_9 = arith.constant 0 : index
    %c0_10 = arith.constant 0 : index
    %20 = vector.load %arg5[%c0_9, %c0_10] : memref<1x24xf32, #tpu.memory_space<vmem>>, vector<1x24xf32>
    %cst_11 = arith.constant dense<0.000000e+00> : vector<8x24xf32>
    %21 = tpu.matmul %18, %19, %cst_11 {dimension_numbers = #tpu.dot_dimension_numbers<[1], [0], [0], [1], [0, 0, 1, 1], [], []>} : vector<8x8xf32>, vector<8x24xf32>, vector<8x24xf32> -> vector<8x24xf32>
    %22 = vector.broadcast %20 : vector<1x24xf32> to vector<8x24xf32>
    %23 = arith.addf %21, %22 : vector<8x24xf32>
    %24 = vector.extract_strided_slice %23 {offsets = [0, 0], sizes = [8, 8], strides = [1, 1]} : vector<8x24xf32> to vector<8x8xf32>
    %25 = arith.negf %24 : vector<8x8xf32>
    %26 = math.exp %25 : vector<8x8xf32>
    %cst_12 = arith.constant 1.000000e+00 : f32
    %27 = vector.broadcast %cst_12 : f32 to vector<8x8xf32>
    %28 = arith.addf %27, %26 : vector<8x8xf32>
    %29 = arith.divf %27, %28 : vector<8x8xf32>
    %30 = vector.extract_strided_slice %23 {offsets = [0, 8], sizes = [8, 8], strides = [1, 1]} : vector<8x24xf32> to vector<8x8xf32>
    %cst_13 = arith.constant 0.000000e+00 : f32
    %31 = vector.broadcast %cst_13 : f32 to vector<8x8xf32>
    %32 = arith.maximumf %30, %31 : vector<8x8xf32>
    %33 = vector.extract_strided_slice %23 {offsets = [0, 16], sizes = [8, 8], strides = [1, 1]} : vector<8x24xf32> to vector<8x8xf32>
    %34 = arith.subf %32, %33 : vector<8x8xf32>
    %35 = arith.mulf %29, %34 : vector<8x8xf32>
    %36 = arith.addf %33, %35 : vector<8x8xf32>
    %c0_14 = arith.constant 0 : index
    %c0_15 = arith.constant 0 : index
    %37 = vector.load %arg6[%c0_14, %c0_15] : memref<8x24xf32, #tpu.memory_space<vmem>>, vector<8x24xf32>
    %c0_16 = arith.constant 0 : index
    %c0_17 = arith.constant 0 : index
    %38 = vector.load %arg7[%c0_16, %c0_17] : memref<1x24xf32, #tpu.memory_space<vmem>>, vector<1x24xf32>
    %cst_18 = arith.constant dense<0.000000e+00> : vector<8x24xf32>
    %39 = tpu.matmul %36, %37, %cst_18 {dimension_numbers = #tpu.dot_dimension_numbers<[1], [0], [0], [1], [0, 0, 1, 1], [], []>} : vector<8x8xf32>, vector<8x24xf32>, vector<8x24xf32> -> vector<8x24xf32>
    %40 = vector.broadcast %38 : vector<1x24xf32> to vector<8x24xf32>
    %41 = arith.addf %39, %40 : vector<8x24xf32>
    %42 = vector.extract_strided_slice %41 {offsets = [0, 0], sizes = [8, 8], strides = [1, 1]} : vector<8x24xf32> to vector<8x8xf32>
    %43 = arith.negf %42 : vector<8x8xf32>
    %44 = math.exp %43 : vector<8x8xf32>
    %cst_19 = arith.constant 1.000000e+00 : f32
    %45 = vector.broadcast %cst_19 : f32 to vector<8x8xf32>
    %46 = arith.addf %45, %44 : vector<8x8xf32>
    %47 = arith.divf %45, %46 : vector<8x8xf32>
    %48 = vector.extract_strided_slice %41 {offsets = [0, 8], sizes = [8, 8], strides = [1, 1]} : vector<8x24xf32> to vector<8x8xf32>
    %cst_20 = arith.constant 0.000000e+00 : f32
    %49 = vector.broadcast %cst_20 : f32 to vector<8x8xf32>
    %50 = arith.maximumf %48, %49 : vector<8x8xf32>
    %51 = vector.extract_strided_slice %41 {offsets = [0, 16], sizes = [8, 8], strides = [1, 1]} : vector<8x24xf32> to vector<8x8xf32>
    %52 = arith.subf %50, %51 : vector<8x8xf32>
    %53 = arith.mulf %47, %52 : vector<8x8xf32>
    %54 = arith.addf %51, %53 : vector<8x8xf32>
    %c0_21 = arith.constant 0 : index
    %c0_22 = arith.constant 0 : index
    %55 = vector.load %arg8[%c0_21, %c0_22] : memref<8x1xf32, #tpu.memory_space<vmem>>, vector<8x1xf32>
    %c0_23 = arith.constant 0 : index
    %c0_24 = arith.constant 0 : index
    %56 = vector.load %arg9[%c0_23, %c0_24] : memref<1x1xf32, #tpu.memory_space<vmem>>, vector<1x1xf32>
    %cst_25 = arith.constant dense<0.000000e+00> : vector<8x1xf32>
    %57 = tpu.matmul %54, %55, %cst_25 {dimension_numbers = #tpu.dot_dimension_numbers<[1], [0], [0], [1], [0, 0, 1, 1], [], []>} : vector<8x8xf32>, vector<8x1xf32>, vector<8x1xf32> -> vector<8x1xf32>
    %58 = vector.broadcast %56 : vector<1x1xf32> to vector<8x1xf32>
    %59 = arith.addf %57, %58 : vector<8x1xf32>
    %60 = arith.negf %59 : vector<8x1xf32>
    %61 = math.exp %60 : vector<8x1xf32>
    %cst_26 = arith.constant 1.000000e+00 : f32
    %62 = vector.broadcast %cst_26 : f32 to vector<8x1xf32>
    %63 = arith.addf %62, %61 : vector<8x1xf32>
    %64 = arith.divf %62, %63 : vector<8x1xf32>
    %65 = vector.shape_cast %64 : vector<8x1xf32> to vector<8x1xf32>
    %66 = vector.broadcast %65 : vector<8x1xf32> to vector<8x128xf32>
    %c0_27 = arith.constant 0 : index
    %c0_28 = arith.constant 0 : index
    %67 = vector.load %arg10[%c0_27, %c0_28] : memref<8x128xf32, #tpu.memory_space<vmem>>, vector<8x128xf32>
    tpu.vector_store %arg10[%c0_27, %c0_28], %66 {strides = array<i32>} : memref<8x128xf32, #tpu.memory_space<vmem>>, vector<8x128xf32>,
    return
  }
  func.func @transform_0(%arg0: i32) -> (i32, i32) {
    %c0_i32 = arith.constant 0 : i32
    %c0_i32_0 = arith.constant 0 : i32
    return %arg0, %c0_i32 : i32, i32
  }
  func.func @transform_1(%arg0: i32) -> (i32, i32) {
    %c0_i32 = arith.constant 0 : i32
    %c0_i32_0 = arith.constant 0 : i32
    %c0_i32_1 = arith.constant 0 : i32
    return %c0_i32, %c0_i32_0 : i32, i32
  }
  func.func @transform_2(%arg0: i32) -> (i32, i32) {
    %c0_i32 = arith.constant 0 : i32
    %c0_i32_0 = arith.constant 0 : i32
    %c0_i32_1 = arith.constant 0 : i32
    return %c0_i32, %c0_i32_0 : i32, i32
  }
  func.func @transform_3(%arg0: i32) -> (i32, i32) {
    %c0_i32 = arith.constant 0 : i32
    %c0_i32_0 = arith.constant 0 : i32
    %c0_i32_1 = arith.constant 0 : i32
    return %c0_i32, %c0_i32_0 : i32, i32
  }
  func.func @transform_4(%arg0: i32) -> (i32, i32) {
    %c0_i32 = arith.constant 0 : i32
    %c0_i32_0 = arith.constant 0 : i32
    %c0_i32_1 = arith.constant 0 : i32
    return %c0_i32, %c0_i32_0 : i32, i32
  }
  func.func @transform_5(%arg0: i32) -> (i32, i32) {
    %c0_i32 = arith.constant 0 : i32
    %c0_i32_0 = arith.constant 0 : i32
    %c0_i32_1 = arith.constant 0 : i32
    return %c0_i32, %c0_i32_0 : i32, i32
  }
  func.func @transform_6(%arg0: i32) -> (i32, i32) {
    %c0_i32 = arith.constant 0 : i32
    %c0_i32_0 = arith.constant 0 : i32
    %c0_i32_1 = arith.constant 0 : i32
    return %c0_i32, %c0_i32_0 : i32, i32
  }
  func.func @transform_7(%arg0: i32) -> (i32, i32) {
    %c0_i32 = arith.constant 0 : i32
    %c0_i32_0 = arith.constant 0 : i32
    %c0_i32_1 = arith.constant 0 : i32
    return %c0_i32, %c0_i32_0 : i32, i32
  }
  func.func @transform_8(%arg0: i32) -> (i32, i32) {
    %c0_i32 = arith.constant 0 : i32
    %c0_i32_0 = arith.constant 0 : i32
    %c0_i32_1 = arith.constant 0 : i32
    return %c0_i32, %c0_i32_0 : i32, i32
  }
  func.func @transform_9(%arg0: i32) -> (i32, i32) {
    %c0_i32 = arith.constant 0 : i32
    %c0_i32_0 = arith.constant 0 : i32
    return %arg0, %c0_i32 : i32, i32
  }
}

</mosaic_0001>

<bundles_post_ra>
// kernel: tpu_custom_call.1
= control target key start
LH: loop header
LB: loop body
LE: loop exit
PB: predicated region body
PF: predicated region fallthrough
CT: control target
= control target key end

     0   :  { %s474_s0 = inlined_call_operand.vmem [shape: f32[8,32], index: 0, kind: input, shape index: {}]   ;;  %s475_s1 = inlined_call_operand.vmem [shape: f32[32,24], index: 1, kind: input, shape index: {}]   ;;  %s476_s2 = inlined_call_operand.vmem [shape: f32[1,24], index: 2, kind: input, shape index: {}]   ;;  %s477_s3 = inlined_call_operand.vmem [shape: f32[8,24], index: 3, kind: input, shape index: {}]   ;;  %s478_s4 = inlined_call_operand.vmem [shape: f32[1,24], index: 4, kind: input, shape index: {}]   ;;  %s479_s5 = inlined_call_operand.vmem [shape: f32[8,24], index: 5, kind: input, shape index: {}]   ;;  %s480_s6 = inlined_call_operand.vmem [shape: f32[1,24], index: 6, kind: input, shape index: {}]   ;;  %s481_s7 = inlined_call_operand.vmem [shape: f32[8,1], index: 7, kind: input, shape index: {}]   ;;  %s482_s8 = inlined_call_operand.<no memory space> [shape: f32[1,1], index: 8, kind: input, shape index: {}]   ;;  %s483_s9 = inlined_call_operand.hbm [shape: f32[8,128], index: 9, kind: output, shape index: {}]  }
   0x1   :  { %v14_v0 = vstv %s482_s8 }
   0x2   :  { %15 = vst [vmem:[#allocation2] sm:$0x1] %v14_v0 }
   0x3   :  { %v39_v1 = vld [vmem:[%s475_s1 + $0x18] sm:$0xff]  ;;  %v38_v2 = vld [vmem:[%s475_s1 + $0x10] sm:$0xff]  ;;  %v37_v3 = vld [vmem:[%s475_s1 + $0x8] sm:$0xff] }
   0x4   :  { %60 = vmatpush.msra.mxu0 %v39_v1 }
   0x6   :  { %61 = vmatpush.msra.mxu0 %v38_v2 }
   0x7   :  { %16 = vsyncpa [#allocation4], 0  ;;  %v36_v4 = vld [vmem:[%s475_s1] sm:$0xff]  ;;  %vm44_vm0 = vcmask 261120   ;;  %s365_s22 = smov 120   ;;  %s367_s23 = smov 112  }
   0x8   :  { %62 = vmatpush.msra.mxu0 %v37_v3  ;;  %v35_v5 = vld [vmem:[%s474_s0] sm:$0xff]  ;;  %s366_s0 = smov 16   ;;  %vm111_vm5 = vcmask 64512   ;;  %s296_s10 = sshll.u32 %s483_s9, 4  ;;  %s297_s10 = int_to_ptr.hbm [resolvable:$true] %s296_s10 }
   0x9   :  { %v319_v6 = vld [vmem:[%s476_s2] ss:$0 sm:$0xff] }
   0xa   :  { %63 = vmatpush.msra.mxu0 %v36_v4  ;;  %v103_v27 = vld [vmem:[%s477_s3] sm:$0xff] }
   0xb   :  { %305 = vmatmul.msk.f32.vlgmr.msra.gmra.mxu0 %vm44_vm0, %v35_v5  ;;  %129 = vmatpush.msra.mxu1 %v103_v27  ;;  %v320_v31 = vld [vmem:[%s478_s4] ss:$0 sm:$0xff] }
   0xc   :  { %v169_v52 = vld [vmem:[%s479_s5] sm:$0xff] }
   0xd   :  { %194 = vmatpush.msra.mxu2 %v169_v52  ;;  %v321_v56 = vld [vmem:[%s480_s6] ss:$0 sm:$0xff] }
  0x88   :  { %v65_v7 = vpop.f32.mrf.mxu0 }
  0x89   :  { %v66_v8 = vadd.f32 %v319_v6, %v65_v7 }
  0x8b   :  { %89 = vrot.lane.b32.xlu0 %v66_v8, %s365_s22  ;;  %v87_v9 = vmax.f32 %v66_v8, 0.0  ;;  %v306_v12 = vmul.f32 -1.442695, %v66_v8 }
  0x8d   :  { %323 = vpow2.f32 %v306_v12 }
  0x93   :  { %v324_v13 = vpop.eup %323 }
  0x94   :  { %v71_v14 = vadd.f32 1.0, %v324_v13  ;;  %v234_v13 = vld [vmem:[%s481_s7] sm:$0xff]  ;;  %s369_s7 = smov [#allocation3]  }
  0x95   :  { %259 = vmatpush.msra.mxu3 %v234_v13  ;;  %s294_s28 = sshll.u32 %s369_s7, 4  ;;  %s295_s28 = int_to_ptr.vmem [resolvable:$true] %s294_s28 }
  0x96   :  { %325 = vrcp.f32 %v71_v14  ;;  %v83_v20 = vand.u32 2147483648, %v71_v14  ;;  %vm77_vm2 = vweird.f32 %v71_v14  ;;  %v81_v21 = vand.u32 2147483647, %v71_v14 }
  0x98   :  { %v84_v23 = vor.u32 1.1754944e-38, %v83_v20  ;;  %vm82_vm4 = vcmp.eq.f32.partialorder %v81_v21, 8.507059e+37 }
  0x9c   :  { %v326_v15 = vpop.eup %325 }
  0x9d   :  { %v73_v16 = vmul.f32 %v326_v15, %v71_v14  ;;  %vm78_vm1 = vweird.f32 %v326_v15 }
  0x9e   :  { %vm79_vm3 = vmor %vm77_vm2, %vm78_vm1 }
  0x9f   :  { %v74_v17 = vsub.f32 1.0, %v73_v16 }
  0xa1   :  { %v75_v18 = vmul.f32 %v326_v15, %v74_v17  ;;  %v368_v17 = vmov 0  }
  0xa2   :  { %318 = vset.pattern.permute.xlu0 %v368_v17 }
  0xa3   :  { %v76_v19 = vadd.f32 %v326_v15, %v75_v18  ;;  %v322_v18 = vld [vmem:[#allocation2] ss:$0 sm:$0xff] }
  0xa5   :  { %v80_v22 = vsel %vm79_vm3, %v326_v15, %v76_v19 }
  0xa6   :  { %v85_v25 = vsel %vm82_vm4, %v84_v23, %v80_v22 }
  0xfd   :  { %v90_v10 = vpop.permute.xlu0 %89 }
  0xfe   :  { %v92_v11 = vsub.f32 %v87_v9, %v90_v10 }
 0x100   :  { %94 = vrot.lane.b32.xlu0 %v92_v11, %s365_s22 }
 0x172   :  { %v95_v24 = vpop.permute.xlu0 %94 }
 0x173   :  { %v97_v26 = vmul.f32 %v95_v24, %v85_v25 }
 0x175   :  { %99 = vrot.lane.b32.xlu1 %v97_v26, %s366_s0 }
 0x1e7   :  { %v100_v28 = vpop.permute.xlu1 %99 }
 0x1e8   :  { %v102_v29 = vadd.f32 %v100_v28, %v66_v8 }
 0x1ea   :  { %109 = vrot.lane.b32.xlu1 %v102_v29, %s367_s23 }
 0x25c   :  { %v110_v30 = vpop.permute.xlu1 %109 }
 0x25d   :  { %307 = vmatmul.msk.f32.vlgmr.msra.gmra.mxu1 %vm111_vm5, %v110_v30 }
 0x2da   :  { %v131_v32 = vpop.f32.mrf.mxu1 }
 0x2db   :  { %v132_v33 = vadd.f32 %v320_v31, %v131_v32 }
 0x2dd   :  { %155 = vrot.lane.b32.xlu2 %v132_v33, %s365_s22  ;;  %v153_v34 = vmax.f32 %v132_v33, 0.0  ;;  %v308_v37 = vmul.f32 -1.442695, %v132_v33 }
 0x2df   :  { %327 = vpow2.f32 %v308_v37 }
 0x2e5   :  { %v328_v38 = vpop.eup %327 }
 0x2e6   :  { %v137_v39 = vadd.f32 1.0, %v328_v38 }
 0x2e8   :  { %329 = vrcp.f32 %v137_v39  ;;  %v149_v45 = vand.u32 2147483648, %v137_v39  ;;  %vm143_vm7 = vweird.f32 %v137_v39  ;;  %v147_v46 = vand.u32 2147483647, %v137_v39 }
 0x2ea   :  { %v150_v48 = vor.u32 1.1754944e-38, %v149_v45  ;;  %vm148_vm9 = vcmp.eq.f32.partialorder %v147_v46, 8.507059e+37 }
 0x2ee   :  { %v330_v40 = vpop.eup %329 }
 0x2ef   :  { %v139_v41 = vmul.f32 %v330_v40, %v137_v39  ;;  %vm144_vm6 = vweird.f32 %v330_v40 }
 0x2f0   :  { %vm145_vm8 = vmor %vm143_vm7, %vm144_vm6 }
 0x2f1   :  { %v140_v42 = vsub.f32 1.0, %v139_v41 }
 0x2f3   :  { %v141_v43 = vmul.f32 %v330_v40, %v140_v42 }
 0x2f5   :  { %v142_v44 = vadd.f32 %v330_v40, %v141_v43 }
 0x2f7   :  { %v146_v47 = vsel %vm145_vm8, %v330_v40, %v142_v44 }
 0x2f8   :  { %v151_v50 = vsel %vm148_vm9, %v150_v48, %v146_v47 }
 0x337   :  { %v156_v35 = vpop.permute.xlu2 %155 }
 0x338   :  { %v158_v36 = vsub.f32 %v153_v34, %v156_v35 }
 0x33a   :  { %160 = vrot.lane.b32.xlu2 %v158_v36, %s365_s22 }
 0x394   :  { %v161_v49 = vpop.permute.xlu2 %160 }
 0x395   :  { %v163_v51 = vmul.f32 %v161_v49, %v151_v50 }
 0x397   :  { %165 = vrot.lane.b32.xlu0 %v163_v51, %s366_s0 }
 0x409   :  { %v166_v53 = vpop.permute.xlu0 %165 }
 0x40a   :  { %v168_v54 = vadd.f32 %v166_v53, %v132_v33 }
 0x40c   :  { %175 = vrot.lane.b32.xlu1 %v168_v54, %s367_s23 }
 0x47e   :  { %v176_v55 = vpop.permute.xlu1 %175 }
 0x47f   :  { %309 = vmatmul.msk.f32.vlgmr.msra.gmra.mxu2 %vm111_vm5, %v176_v55 }
 0x502   :  { %v196_v57 = vpop.f32.mrf.mxu2 }
 0x503   :  { %v197_v58 = vadd.f32 %v321_v56, %v196_v57 }
 0x505   :  { %220 = vrot.lane.b32.xlu2 %v197_v58, %s365_s22  ;;  %v218_v59 = vmax.f32 %v197_v58, 0.0  ;;  %v310_v62 = vmul.f32 -1.442695, %v197_v58 }
 0x507   :  { %331 = vpow2.f32 %v310_v62 }
 0x50d   :  { %v332_v63 = vpop.eup %331 }
 0x50e   :  { %v202_v0 = vadd.f32 1.0, %v332_v63 }
 0x510   :  { %333 = vrcp.f32 %v202_v0  ;;  %v214_v6 = vand.u32 2147483648, %v202_v0  ;;  %vm208_vm11 = vweird.f32 %v202_v0  ;;  %v212_v7 = vand.u32 2147483647, %v202_v0 }
 0x512   :  { %v215_v9 = vor.u32 1.1754944e-38, %v214_v6  ;;  %vm213_vm13 = vcmp.eq.f32.partialorder %v212_v7, 8.507059e+37 }
 0x516   :  { %v334_v1 = vpop.eup %333 }
 0x517   :  { %v204_v2 = vmul.f32 %v334_v1, %v202_v0  ;;  %vm209_vm10 = vweird.f32 %v334_v1 }
 0x518   :  { %vm210_vm12 = vmor %vm208_vm11, %vm209_vm10 }
 0x519   :  { %v205_v3 = vsub.f32 1.0, %v204_v2 }
 0x51b   :  { %v206_v4 = vmul.f32 %v334_v1, %v205_v3 }
 0x51d   :  { %v207_v5 = vadd.f32 %v334_v1, %v206_v4 }
 0x51f   :  { %v211_v8 = vsel %vm210_vm12, %v334_v1, %v207_v5 }
 0x520   :  { %v216_v11 = vsel %vm213_vm13, %v215_v9, %v211_v8 }
 0x55f   :  { %v221_v60 = vpop.permute.xlu2 %220 }
 0x560   :  { %v223_v61 = vsub.f32 %v218_v59, %v221_v60 }
 0x562   :  { %225 = vrot.lane.b32.xlu0 %v223_v61, %s365_s22 }
 0x5d4   :  { %v226_v10 = vpop.permute.xlu0 %225 }
 0x5d5   :  { %v228_v12 = vmul.f32 %v226_v10, %v216_v11 }
 0x5d7   :  { %230 = vrot.lane.b32.xlu1 %v228_v12, %s366_s0 }
 0x649   :  { %v231_v14 = vpop.permute.xlu1 %230 }
 0x64a   :  { %v233_v15 = vadd.f32 %v231_v14, %v197_v58 }
 0x64c   :  { %240 = vrot.lane.b32.xlu2 %v233_v15, %s367_s23 }
 0x6a6   :  { %v241_v16 = vpop.permute.xlu2 %240 }
 0x6a7   :  { %311 = vmatmul.msk.f32.vlgmr.msra.gmra.mxu3 %vm111_vm5, %v241_v16 }
 0x72a   :  { %v261_v19 = vpop.f32.mrf.mxu3 }
 0x72b   :  { %v262_v20 = vadd.f32 %v322_v18, %v261_v19 }
 0x72d   :  { %v312_v21 = vmul.f32 -1.442695, %v262_v20 }
 0x72f   :  { %335 = vpow2.f32 %v312_v21 }
 0x735   :  { %v336_v22 = vpop.eup %335 }
 0x736   :  { %v267_v23 = vadd.f32 1.0, %v336_v22 }
 0x738   :  { %337 = vrcp.f32 %v267_v23  ;;  %v279_v27 = vand.u32 2147483648, %v267_v23  ;;  %v277_v29 = vand.u32 2147483647, %v267_v23  ;;  %vm273_vm15 = vweird.f32 %v267_v23 }
 0x73a   :  { %v280_v31 = vor.u32 1.1754944e-38, %v279_v27  ;;  %vm278_vm1 = vcmp.eq.f32.partialorder %v277_v29, 8.507059e+37 }
 0x73e   :  { %v338_v24 = vpop.eup %337 }
 0x73f   :  { %v269_v25 = vmul.f32 %v338_v24, %v267_v23  ;;  %vm274_vm14 = vweird.f32 %v338_v24 }
 0x740   :  { %vm275_vm0 = vmor %vm273_vm15, %vm274_vm14 }
 0x741   :  { %v270_v26 = vsub.f32 1.0, %v269_v25 }
 0x743   :  { %v271_v28 = vmul.f32 %v338_v24, %v270_v26 }
 0x745   :  { %v272_v30 = vadd.f32 %v338_v24, %v271_v28 }
 0x747   :  { %v276_v32 = vsel %vm275_vm0, %v338_v24, %v272_v30 }
 0x748   :  { %v281_v33 = vsel %vm278_vm1, %v280_v31, %v276_v32 }
 0x749   :  { %285 = vperm.xlu0 %318, %v281_v33  }
 0x7bb   :  { %v286_v34 = vpop.permute.xlu0 %285 }
 0x7bc   :  { %288 = vst [vmem:[#allocation3] sm:$0xff] %v286_v34 }
 0x7bd   :  { %299 = dma.vmem_to_hbm [thread:$0]  %s295_s28, 128, %s297_s10, [#allocation4]  }
 0x7be   :  { %363 = dma.done.wait [#allocation4], 128  }
 0x7bf   :  { %364 = vsyncadd [#allocation4], 4294967168 }
 0x7c0   :  { %304 = vsyncpa [#allocation4], 1 }

</bundles_post_ra>
